<compile_context>
chip_gen: v5e
topology: v5e:2x2
jax: 0.10.0
libtpu: 0.0.40
codegen_flags: <defaults>
</compile_context>

<pallas_src>
import functools

import jax
import jax.numpy as jnp
import numpy as np
from jax import lax
from jax.experimental import pallas as pl
from jax.experimental.pallas import tpu as pltpu


# -----------------------------------------------------------------------------
# Fused kernel: QKV projection + per-head attention + output projection.
# grid = (B, S // q_tile).
# -----------------------------------------------------------------------------
def _mha_kernel(x_ref, wq_ref, bq_ref, wk_ref, bk_ref, wv_ref, bv_ref,
                wp_ref, bp_ref, o_ref, k_scr, v_scr, *,
                scale, n_head, head_dim, q_tile, compute_dtype):
    approx = compute_dtype == jnp.bfloat16

    # ---- K/V for the whole sequence: two lane-dense (E, E) matmuls, computed
    # only on the first q-tile of each batch element; persist in VMEM scratch
    # across q-tiles (q-tile grid axis is "arbitrary").
    @pl.when(pl.program_id(1) == 0)
    def _():
        x_all = x_ref[0].astype(compute_dtype)                            # (S, E)
        k_scr[...] = (jnp.dot(x_all, wk_ref[...],
                              preferred_element_type=jnp.float32)
                      + bk_ref[...]).astype(k_scr.dtype)                  # (S, E)
        v_scr[...] = (jnp.dot(x_all, wv_ref[...],
                              preferred_element_type=jnp.float32)
                      + bv_ref[...]).astype(v_scr.dtype)                  # (S, E)

    # ---- Q for this q-tile: one lane-dense (E, E) matmul. ----
    row0 = pl.multiple_of(pl.program_id(1) * q_tile, q_tile)
    x_q = x_ref[0, pl.ds(row0, q_tile), :].astype(compute_dtype)          # (tq, E)
    q = (jnp.dot(x_q, wq_ref[...], preferred_element_type=jnp.float32)
         + bq_ref[...]).astype(compute_dtype)                            # (tq, E)

    k = k_scr[...]                                                        # (S, E)
    v = v_scr[...]                                                        # (S, E)

    # Contract the last dims directly (q @ k^T without materializing k^T).
    dn = (((1,), (1,)), ((), ()))
    head_outs = []
    for h in range(n_head):                                               # static unroll
        lo = h * head_dim
        hi = lo + head_dim
        s = lax.dot_general(q[:, lo:hi], k[:, lo:hi], dn,
                            preferred_element_type=jnp.float32) * scale   # (tq, S) f32
        # Softmax -- all math in f32.
        s = s - jnp.max(s, axis=-1, keepdims=True)
        p = jnp.exp(s)
        p = p * pl.reciprocal(jnp.sum(p, axis=-1, keepdims=True), approx=approx)
        head_outs.append(jnp.dot(p.astype(compute_dtype), v[:, lo:hi],
                                 preferred_element_type=jnp.float32))     # (tq, D)

    # Fused output projection: one lane-dense (tq, E) @ (E, E) matmul.
    cat = jnp.concatenate(head_outs, axis=-1).astype(compute_dtype)       # (tq, E)
    out = jnp.dot(cat, wp_ref[...], preferred_element_type=jnp.float32) + bp_ref[...]
    o_ref[0] = out.astype(o_ref.dtype)


# -----------------------------------------------------------------------------
# Wrapper.
# -----------------------------------------------------------------------------
def multi_head_attention(x, params, n_head, head_dim, *,
                         q_tile=None, use_bf16_mxu=False):
    """x: (B, S, E) float32, E == n_head * head_dim.  params: fused weights."""
    B, S, E = x.shape
    assert E == n_head * head_dim

    compute_dtype = jnp.bfloat16 if use_bf16_mxu else jnp.float32
    scale = float(head_dim) ** -0.5

    # Weights are cast to the MXU compute dtype once, outside the kernel
    # (no-op for f32); biases stay f32 (added to f32 accumulators).
    wq = params["wq"].astype(compute_dtype)        # (E, E)
    wk = params["wk"].astype(compute_dtype)        # (E, E)
    wv = params["wv"].astype(compute_dtype)        # (E, E)
    wp = params["wp"].astype(compute_dtype)        # (E, E)
    bq, bk, bv, bp = params["bq"], params["bk"], params["bv"], params["bp"]  # (1, E)

    if q_tile is None:
        q_tile = S
        for cand in (512, 256, 128):
            if S % cand == 0:
                q_tile = cand
                break
    assert S % q_tile == 0
    assert q_tile == S or q_tile % 8 == 0
    n_q = S // q_tile

    # Rough VMEM budget: double-buffered blocks + K/V scratch + temporaries,
    # capped at 64 MiB so the same setting is valid on v5e/v6e and v7x.
    f32 = 4
    cd = jnp.dtype(compute_dtype).itemsize
    blk = (S * E + q_tile * E + 4 * E) * f32 + 4 * E * E * cd
    tmp = (q_tile * S + 6 * q_tile * E + S * E) * f32
    scr = 2 * S * E * cd
    vmem_limit = int(min(64 * 1024 * 1024,
                         max(2 * blk + scr + tmp, 32 * 1024 * 1024)))

    kernel = functools.partial(
        _mha_kernel, scale=scale, n_head=n_head, head_dim=head_dim,
        q_tile=q_tile, compute_dtype=compute_dtype)

    return pl.pallas_call(
        kernel,
        out_shape=jax.ShapeDtypeStruct((B, S, E), x.dtype),
        grid_spec=pltpu.PrefetchScalarGridSpec(
            num_scalar_prefetch=0,
            grid=(B, n_q),
            in_specs=[
                pl.BlockSpec((1, S, E), lambda b, i: (b, 0, 0)),     # x (full seq)
                pl.BlockSpec((E, E), lambda b, i: (0, 0)),           # wq
                pl.BlockSpec((1, E), lambda b, i: (0, 0)),           # bq
                pl.BlockSpec((E, E), lambda b, i: (0, 0)),           # wk
                pl.BlockSpec((1, E), lambda b, i: (0, 0)),           # bk
                pl.BlockSpec((E, E), lambda b, i: (0, 0)),           # wv
                pl.BlockSpec((1, E), lambda b, i: (0, 0)),           # bv
                pl.BlockSpec((E, E), lambda b, i: (0, 0)),           # wp
                pl.BlockSpec((1, E), lambda b, i: (0, 0)),           # bp
            ],
            out_specs=pl.BlockSpec((1, q_tile, E), lambda b, i: (b, i, 0)),
            scratch_shapes=[
                pltpu.VMEM((S, E), compute_dtype),   # K (all heads concat)
                pltpu.VMEM((S, E), compute_dtype),   # V (all heads concat)
            ],
        ),
        compiler_params=pltpu.CompilerParams(
            dimension_semantics=("parallel", "arbitrary"),
            vmem_limit_bytes=vmem_limit,
        ),
    )(x, wq, bq, wk, bk, wv, bv, wp, bp)


# -----------------------------------------------------------------------------
# Pure-JAX reference mirroring the PyTorch forward exactly.
# -----------------------------------------------------------------------------
def _reference(x, params, n_head, head_dim):
    q = x @ params["wq"] + params["bq"]
    k = x @ params["wk"] + params["bk"]
    v = x @ params["wv"] + params["bv"]
    outs = []
    for h in range(n_head):
        sl = slice(h * head_dim, (h + 1) * head_dim)
        w = (q[..., sl] @ jnp.swapaxes(k[..., sl], -2, -1)) * head_dim ** (-0.5)
        w = jax.nn.softmax(w, axis=-1)
        outs.append(w @ v[..., sl])
    cat = jnp.concatenate(outs, axis=-1)
    return cat @ params["wp"] + params["bp"]


if __name__ == "__main__":
    # Small shapes consistent with the module: n_embed == n_head * head_size
    # (the real module uses n_head=11, head_size=177, n_embed=1947).
    B, S = 2, 16
    n_head, head_size = 4, 8
    n_embed = n_head * head_size          # 32

    key = jax.random.PRNGKey(0)
    ks = jax.random.split(key, 9)

    def init(k, shape, s=0.05):
        return jax.random.normal(k, shape, dtype=jnp.float32) * s

    # Per-head Linear(E, D) weights fused across heads, pre-transposed so the
    # kernel computes x @ W:  wq[:, h*D:(h+1)*D] == W_q_head_h^T
    # (PyTorch Linear does x @ W.T + b).  wp is Linear(E, E) stored (in, out).
    params = {
        "wq": init(ks[0], (n_embed, n_embed)), "bq": init(ks[1], (1, n_embed)),
        "wk": init(ks[2], (n_embed, n_embed)), "bk": init(ks[3], (1, n_embed)),
        "wv": init(ks[4], (n_embed, n_embed)), "bv": init(ks[5], (1, n_embed)),
        "wp": init(ks[6], (n_embed, n_embed)), "bp": init(ks[7], (1, n_embed)),
    }

    x = jax.random.normal(ks[8], (B, S, n_embed), dtype=jnp.float32)

    ref = _reference(x, params, n_head, head_size)

    # f32 MXU operands: tight check (q_tile=8 -> 2 q-tiles, exercises the
    # persistent K/V scratch carried across grid steps).
    out_f32 = multi_head_attention(x, params, n_head, head_size,
                                   q_tile=8, use_bf16_mxu=False)
    out_f32 = jax.block_until_ready(out_f32)
    np.testing.assert_allclose(np.asarray(out_f32), np.asarray(ref),
                               rtol=2e-4, atol=2e-5)

    # bf16 MXU operands (f32 accumulation, f32 softmax): looser tolerance.
    out_bf16 = multi_head_attention(x, params, n_head, head_size,
                                    q_tile=8, use_bf16_mxu=True)
    out_bf16 = jax.block_until_ready(out_bf16)
    np.testing.assert_allclose(np.asarray(out_bf16), np.asarray(ref),
                               rtol=5e-2, atol=1e-2)

    print("KERNEL_OK")
</pallas_src>

<mosaic_0001>
module attributes {stable_mosaic.version = 11 : i64} {
  func.func @_mha_kernel(%arg0: i32, %arg1: i32, %arg2: memref<1x16x32xf32, #tpu.memory_space<vmem>>, %arg3: memref<32x32xf32, #tpu.memory_space<vmem>>, %arg4: memref<1x32xf32, #tpu.memory_space<vmem>>, %arg5: memref<32x32xf32, #tpu.memory_space<vmem>>, %arg6: memref<1x32xf32, #tpu.memory_space<vmem>>, %arg7: memref<32x32xf32, #tpu.memory_space<vmem>>, %arg8: memref<1x32xf32, #tpu.memory_space<vmem>>, %arg9: memref<32x32xf32, #tpu.memory_space<vmem>>, %arg10: memref<1x32xf32, #tpu.memory_space<vmem>>, %arg11: memref<1x8x32xf32, #tpu.memory_space<vmem>>, %arg12: memref<16x32xf32, #tpu.memory_space<vmem>>, %arg13: memref<16x32xf32, #tpu.memory_space<vmem>>) attributes {dimension_semantics = [#tpu.dimension_semantics<parallel>, #tpu.dimension_semantics<arbitrary>], iteration_bounds = array<i64: 2, 2>, scalar_prefetch = 0 : i64, scratch_operands = 2 : i64, tpu.core_type = #tpu.core_type<tc>, window_params = [{transform_indices = @transform_0, window_bounds = array<i64: 1, 16, 32>}, {pipeline_mode = #tpu.pipeline_mode<synchronous>, transform_indices = @transform_1, window_bounds = array<i64: 32, 32>}, {pipeline_mode = #tpu.pipeline_mode<synchronous>, transform_indices = @transform_2, window_bounds = array<i64: 1, 32>}, {pipeline_mode = #tpu.pipeline_mode<synchronous>, transform_indices = @transform_3, window_bounds = array<i64: 32, 32>}, {pipeline_mode = #tpu.pipeline_mode<synchronous>, transform_indices = @transform_4, window_bounds = array<i64: 1, 32>}, {pipeline_mode = #tpu.pipeline_mode<synchronous>, transform_indices = @transform_5, window_bounds = array<i64: 32, 32>}, {pipeline_mode = #tpu.pipeline_mode<synchronous>, transform_indices = @transform_6, window_bounds = array<i64: 1, 32>}, {pipeline_mode = #tpu.pipeline_mode<synchronous>, transform_indices = @transform_7, window_bounds = array<i64: 32, 32>}, {pipeline_mode = #tpu.pipeline_mode<synchronous>, transform_indices = @transform_8, window_bounds = array<i64: 1, 32>}, {transform_indices = @transform_9, window_bounds = array<i64: 1, 8, 32>}]} {
    %c0_i32 = arith.constant 0 : i32
    %0 = arith.cmpi eq, %arg1, %c0_i32 : i32
    %1 = arith.extui %0 : i1 to i32
    %c0_i32_0 = arith.constant 0 : i32
    %2 = arith.cmpi ne, %1, %c0_i32_0 : i32
    scf.if %2 {
      %c0_38 = arith.constant 0 : index
      %c0_39 = arith.constant 0 : index
      %c0_40 = arith.constant 0 : index
      %92 = vector.load %arg2[%c0_38, %c0_39, %c0_40] : memref<1x16x32xf32, #tpu.memory_space<vmem>>, vector<1x16x32xf32>
      %93 = vector.shape_cast %92 : vector<1x16x32xf32> to vector<16x32xf32>
      %c0_41 = arith.constant 0 : index
      %c0_42 = arith.constant 0 : index
      %94 = vector.load %arg5[%c0_41, %c0_42] : memref<32x32xf32, #tpu.memory_space<vmem>>, vector<32x32xf32>
      %cst_43 = arith.constant dense<0.000000e+00> : vector<16x32xf32>
      %95 = tpu.matmul %93, %94, %cst_43 {dimension_numbers = #tpu.dot_dimension_numbers<[1], [0], [0], [1], [0, 0, 1, 1], [], []>} : vector<16x32xf32>, vector<32x32xf32>, vector<16x32xf32> -> vector<16x32xf32>
      %c0_44 = arith.constant 0 : index
      %c0_45 = arith.constant 0 : index
      %96 = vector.load %arg6[%c0_44, %c0_45] : memref<1x32xf32, #tpu.memory_space<vmem>>, vector<1x32xf32>
      %97 = vector.broadcast %96 : vector<1x32xf32> to vector<16x32xf32>
      %98 = arith.addf %95, %97 : vector<16x32xf32>
      %c0_46 = arith.constant 0 : index
      %c0_47 = arith.constant 0 : index
      %99 = vector.load %arg12[%c0_46, %c0_47] : memref<16x32xf32, #tpu.memory_space<vmem>>, vector<16x32xf32>
      tpu.vector_store %arg12[%c0_46, %c0_47], %98 {strides = array<i32>} : memref<16x32xf32, #tpu.memory_space<vmem>>, vector<16x32xf32>,
      %c0_48 = arith.constant 0 : index
      %c0_49 = arith.constant 0 : index
      %100 = vector.load %arg7[%c0_48, %c0_49] : memref<32x32xf32, #tpu.memory_space<vmem>>, vector<32x32xf32>
      %cst_50 = arith.constant dense<0.000000e+00> : vector<16x32xf32>
      %101 = tpu.matmul %93, %100, %cst_50 {dimension_numbers = #tpu.dot_dimension_numbers<[1], [0], [0], [1], [0, 0, 1, 1], [], []>} : vector<16x32xf32>, vector<32x32xf32>, vector<16x32xf32> -> vector<16x32xf32>
      %c0_51 = arith.constant 0 : index
      %c0_52 = arith.constant 0 : index
      %102 = vector.load %arg8[%c0_51, %c0_52] : memref<1x32xf32, #tpu.memory_space<vmem>>, vector<1x32xf32>
      %103 = vector.broadcast %102 : vector<1x32xf32> to vector<16x32xf32>
      %104 = arith.addf %101, %103 : vector<16x32xf32>
      %c0_53 = arith.constant 0 : index
      %c0_54 = arith.constant 0 : index
      %105 = vector.load %arg13[%c0_53, %c0_54] : memref<16x32xf32, #tpu.memory_space<vmem>>, vector<16x32xf32>
      tpu.vector_store %arg13[%c0_53, %c0_54], %104 {strides = array<i32>} : memref<16x32xf32, #tpu.memory_space<vmem>>, vector<16x32xf32>,
    } else {
    }
    %c8_i32 = arith.constant 8 : i32
    %3 = arith.muli %arg1, %c8_i32 : i32
    %4 = tpu.assume_multiple %3, 8 : i32
    %c0 = arith.constant 0 : index
    %5 = arith.index_cast %4 : i32 to index
    %c0_1 = arith.constant 0 : index
    %6 = vector.load %arg2[%c0, %5, %c0_1] : memref<1x16x32xf32, #tpu.memory_space<vmem>>, vector<1x8x32xf32>
    %7 = vector.shape_cast %6 : vector<1x8x32xf32> to vector<8x32xf32>
    %c0_2 = arith.constant 0 : index
    %c0_3 = arith.constant 0 : index
    %8 = vector.load %arg3[%c0_2, %c0_3] : memref<32x32xf32, #tpu.memory_space<vmem>>, vector<32x32xf32>
    %cst = arith.constant dense<0.000000e+00> : vector<8x32xf32>
    %9 = tpu.matmul %7, %8, %cst {dimension_numbers = #tpu.dot_dimension_numbers<[1], [0], [0], [1], [0, 0, 1, 1], [], []>} : vector<8x32xf32>, vector<32x32xf32>, vector<8x32xf32> -> vector<8x32xf32>
    %c0_4 = arith.constant 0 : index
    %c0_5 = arith.constant 0 : index
    %10 = vector.load %arg4[%c0_4, %c0_5] : memref<1x32xf32, #tpu.memory_space<vmem>>, vector<1x32xf32>
    %11 = vector.broadcast %10 : vector<1x32xf32> to vector<8x32xf32>
    %12 = arith.addf %9, %11 : vector<8x32xf32>
    %c0_6 = arith.constant 0 : index
    %c0_7 = arith.constant 0 : index
    %13 = vector.load %arg12[%c0_6, %c0_7] : memref<16x32xf32, #tpu.memory_space<vmem>>, vector<16x32xf32>
    %c0_8 = arith.constant 0 : index
    %c0_9 = arith.constant 0 : index
    %14 = vector.load %arg13[%c0_8, %c0_9] : memref<16x32xf32, #tpu.memory_space<vmem>>, vector<16x32xf32>
    %15 = vector.extract_strided_slice %12 {offsets = [0, 0], sizes = [8, 8], strides = [1, 1]} : vector<8x32xf32> to vector<8x8xf32>
    %16 = vector.extract_strided_slice %13 {offsets = [0, 0], sizes = [16, 8], strides = [1, 1]} : vector<16x32xf32> to vector<16x8xf32>
    %cst_10 = arith.constant dense<0.000000e+00> : vector<8x16xf32>
    %17 = tpu.matmul %15, %16, %cst_10 {dimension_numbers = #tpu.dot_dimension_numbers<[1], [1], [0], [0], [0, 0, 1, 0], [], []>} : vector<8x8xf32>, vector<16x8xf32>, vector<8x16xf32> -> vector<8x16xf32>
    %cst_11 = arith.constant 0.353553385 : f32
    %18 = vector.broadcast %cst_11 : f32 to vector<8x16xf32>
    %19 = arith.mulf %17, %18 : vector<8x16xf32>
    %cst_12 = arith.constant dense<0xFF800000> : vector<8xf32>
    %20 = vector.multi_reduction <maximumf>, %19, %cst_12 [1] : vector<8x16xf32> to vector<8xf32>
    %21 = vector.shape_cast %20 : vector<8xf32> to vector<8x1xf32>
    %22 = vector.broadcast %21 : vector<8x1xf32> to vector<8x16xf32>
    %23 = arith.subf %19, %22 : vector<8x16xf32>
    %24 = math.exp %23 : vector<8x16xf32>
    %cst_13 = arith.constant dense<0.000000e+00> : vector<8xf32>
    %25 = vector.multi_reduction <add>, %24, %cst_13 [1] : vector<8x16xf32> to vector<8xf32>
    %26 = vector.shape_cast %25 : vector<8xf32> to vector<8x1xf32>
    %27 = tpu.reciprocal %26 : vector<8x1xf32> -> vector<8x1xf32>
    %28 = vector.broadcast %27 : vector<8x1xf32> to vector<8x16xf32>
    %29 = arith.mulf %24, %28 : vector<8x16xf32>
    %30 = vector.extract_strided_slice %14 {offsets = [0, 0], sizes = [16, 8], strides = [1, 1]} : vector<16x32xf32> to vector<16x8xf32>
    %cst_14 = arith.constant dense<0.000000e+00> : vector<8x8xf32>
    %31 = tpu.matmul %29, %30, %cst_14 {dimension_numbers = #tpu.dot_dimension_numbers<[1], [0], [0], [1], [0, 0, 1, 1], [], []>} : vector<8x16xf32>, vector<16x8xf32>, vector<8x8xf32> -> vector<8x8xf32>
    %32 = vector.extract_strided_slice %12 {offsets = [0, 8], sizes = [8, 8], strides = [1, 1]} : vector<8x32xf32> to vector<8x8xf32>
    %33 = vector.extract_strided_slice %13 {offsets = [0, 8], sizes = [16, 8], strides = [1, 1]} : vector<16x32xf32> to vector<16x8xf32>
    %cst_15 = arith.constant dense<0.000000e+00> : vector<8x16xf32>
    %34 = tpu.matmul %32, %33, %cst_15 {dimension_numbers = #tpu.dot_dimension_numbers<[1], [1], [0], [0], [0, 0, 1, 0], [], []>} : vector<8x8xf32>, vector<16x8xf32>, vector<8x16xf32> -> vector<8x16xf32>
    %cst_16 = arith.constant 0.353553385 : f32
    %35 = vector.broadcast %cst_16 : f32 to vector<8x16xf32>
    %36 = arith.mulf %34, %35 : vector<8x16xf32>
    %cst_17 = arith.constant dense<0xFF800000> : vector<8xf32>
    %37 = vector.multi_reduction <maximumf>, %36, %cst_17 [1] : vector<8x16xf32> to vector<8xf32>
    %38 = vector.shape_cast %37 : vector<8xf32> to vector<8x1xf32>
    %39 = vector.broadcast %38 : vector<8x1xf32> to vector<8x16xf32>
    %40 = arith.subf %36, %39 : vector<8x16xf32>
    %41 = math.exp %40 : vector<8x16xf32>
    %cst_18 = arith.constant dense<0.000000e+00> : vector<8xf32>
    %42 = vector.multi_reduction <add>, %41, %cst_18 [1] : vector<8x16xf32> to vector<8xf32>
    %43 = vector.shape_cast %42 : vector<8xf32> to vector<8x1xf32>
    %44 = tpu.reciprocal %43 : vector<8x1xf32> -> vector<8x1xf32>
    %45 = vector.broadcast %44 : vector<8x1xf32> to vector<8x16xf32>
    %46 = arith.mulf %41, %45 : vector<8x16xf32>
    %47 = vector.extract_strided_slice %14 {offsets = [0, 8], sizes = [16, 8], strides = [1, 1]} : vector<16x32xf32> to vector<16x8xf32>
    %cst_19 = arith.constant dense<0.000000e+00> : vector<8x8xf32>
    %48 = tpu.matmul %46, %47, %cst_19 {dimension_numbers = #tpu.dot_dimension_numbers<[1], [0], [0], [1], [0, 0, 1, 1], [], []>} : vector<8x16xf32>, vector<16x8xf32>, vector<8x8xf32> -> vector<8x8xf32>
    %49 = vector.extract_strided_slice %12 {offsets = [0, 16], sizes = [8, 8], strides = [1, 1]} : vector<8x32xf32> to vector<8x8xf32>
    %50 = vector.extract_strided_slice %13 {offsets = [0, 16], sizes = [16, 8], strides = [1, 1]} : vector<16x32xf32> to vector<16x8xf32>
    %cst_20 = arith.constant dense<0.000000e+00> : vector<8x16xf32>
    %51 = tpu.matmul %49, %50, %cst_20 {dimension_numbers = #tpu.dot_dimension_numbers<[1], [1], [0], [0], [0, 0, 1, 0], [], []>} : vector<8x8xf32>, vector<16x8xf32>, vector<8x16xf32> -> vector<8x16xf32>
    %cst_21 = arith.constant 0.353553385 : f32
    %52 = vector.broadcast %cst_21 : f32 to vector<8x16xf32>
    %53 = arith.mulf %51, %52 : vector<8x16xf32>
    %cst_22 = arith.constant dense<0xFF800000> : vector<8xf32>
    %54 = vector.multi_reduction <maximumf>, %53, %cst_22 [1] : vector<8x16xf32> to vector<8xf32>
    %55 = vector.shape_cast %54 : vector<8xf32> to vector<8x1xf32>
    %56 = vector.broadcast %55 : vector<8x1xf32> to vector<8x16xf32>
    %57 = arith.subf %53, %56 : vector<8x16xf32>
    %58 = math.exp %57 : vector<8x16xf32>
    %cst_23 = arith.constant dense<0.000000e+00> : vector<8xf32>
    %59 = vector.multi_reduction <add>, %58, %cst_23 [1] : vector<8x16xf32> to vector<8xf32>
    %60 = vector.shape_cast %59 : vector<8xf32> to vector<8x1xf32>
    %61 = tpu.reciprocal %60 : vector<8x1xf32> -> vector<8x1xf32>
    %62 = vector.broadcast %61 : vector<8x1xf32> to vector<8x16xf32>
    %63 = arith.mulf %58, %62 : vector<8x16xf32>
    %64 = vector.extract_strided_slice %14 {offsets = [0, 16], sizes = [16, 8], strides = [1, 1]} : vector<16x32xf32> to vector<16x8xf32>
    %cst_24 = arith.constant dense<0.000000e+00> : vector<8x8xf32>
    %65 = tpu.matmul %63, %64, %cst_24 {dimension_numbers = #tpu.dot_dimension_numbers<[1], [0], [0], [1], [0, 0, 1, 1], [], []>} : vector<8x16xf32>, vector<16x8xf32>, vector<8x8xf32> -> vector<8x8xf32>
    %66 = vector.extract_strided_slice %12 {offsets = [0, 24], sizes = [8, 8], strides = [1, 1]} : vector<8x32xf32> to vector<8x8xf32>
    %67 = vector.extract_strided_slice %13 {offsets = [0, 24], sizes = [16, 8], strides = [1, 1]} : vector<16x32xf32> to vector<16x8xf32>
    %cst_25 = arith.constant dense<0.000000e+00> : vector<8x16xf32>
    %68 = tpu.matmul %66, %67, %cst_25 {dimension_numbers = #tpu.dot_dimension_numbers<[1], [1], [0], [0], [0, 0, 1, 0], [], []>} : vector<8x8xf32>, vector<16x8xf32>, vector<8x16xf32> -> vector<8x16xf32>
    %cst_26 = arith.constant 0.353553385 : f32
    %69 = vector.broadcast %cst_26 : f32 to vector<8x16xf32>
    %70 = arith.mulf %68, %69 : vector<8x16xf32>
    %cst_27 = arith.constant dense<0xFF800000> : vector<8xf32>
    %71 = vector.multi_reduction <maximumf>, %70, %cst_27 [1] : vector<8x16xf32> to vector<8xf32>
    %72 = vector.shape_cast %71 : vector<8xf32> to vector<8x1xf32>
    %73 = vector.broadcast %72 : vector<8x1xf32> to vector<8x16xf32>
    %74 = arith.subf %70, %73 : vector<8x16xf32>
    %75 = math.exp %74 : vector<8x16xf32>
    %cst_28 = arith.constant dense<0.000000e+00> : vector<8xf32>
    %76 = vector.multi_reduction <add>, %75, %cst_28 [1] : vector<8x16xf32> to vector<8xf32>
    %77 = vector.shape_cast %76 : vector<8xf32> to vector<8x1xf32>
    %78 = tpu.reciprocal %77 : vector<8x1xf32> -> vector<8x1xf32>
    %79 = vector.broadcast %78 : vector<8x1xf32> to vector<8x16xf32>
    %80 = arith.mulf %75, %79 : vector<8x16xf32>
    %81 = vector.extract_strided_slice %14 {offsets = [0, 24], sizes = [16, 8], strides = [1, 1]} : vector<16x32xf32> to vector<16x8xf32>
    %cst_29 = arith.constant dense<0.000000e+00> : vector<8x8xf32>
    %82 = tpu.matmul %80, %81, %cst_29 {dimension_numbers = #tpu.dot_dimension_numbers<[1], [0], [0], [1], [0, 0, 1, 1], [], []>} : vector<8x16xf32>, vector<16x8xf32>, vector<8x8xf32> -> vector<8x8xf32>
    %83 = tpu.concatenate %31, %48, %65, %82 in 1 : vector<8x8xf32>, vector<8x8xf32>, vector<8x8xf32>, vector<8x8xf32> -> vector<8x32xf32>
    %c0_30 = arith.constant 0 : index
    %c0_31 = arith.constant 0 : index
    %84 = vector.load %arg9[%c0_30, %c0_31] : memref<32x32xf32, #tpu.memory_space<vmem>>, vector<32x32xf32>
    %cst_32 = arith.constant dense<0.000000e+00> : vector<8x32xf32>
    %85 = tpu.matmul %83, %84, %cst_32 {dimension_numbers = #tpu.dot_dimension_numbers<[1], [0], [0], [1], [0, 0, 1, 1], [], []>} : vector<8x32xf32>, vector<32x32xf32>, vector<8x32xf32> -> vector<8x32xf32>
    %c0_33 = arith.constant 0 : index
    %c0_34 = arith.constant 0 : index
    %86 = vector.load %arg10[%c0_33, %c0_34] : memref<1x32xf32, #tpu.memory_space<vmem>>, vector<1x32xf32>
    %87 = vector.broadcast %86 : vector<1x32xf32> to vector<8x32xf32>
    %88 = arith.addf %85, %87 : vector<8x32xf32>
    %c0_35 = arith.constant 0 : index
    %c0_36 = arith.constant 0 : index
    %c0_37 = arith.constant 0 : index
    %89 = vector.load %arg11[%c0_35, %c0_36, %c0_37] : memref<1x8x32xf32, #tpu.memory_space<vmem>>, vector<1x8x32xf32>
    %90 = vector.shape_cast %89 : vector<1x8x32xf32> to vector<8x32xf32>
    %91 = vector.shape_cast %88 : vector<8x32xf32> to vector<1x8x32xf32>
    tpu.vector_store %arg11[%c0_35, %c0_36, %c0_37], %91 {strides = array<i32>} : memref<1x8x32xf32, #tpu.memory_space<vmem>>, vector<1x8x32xf32>,
    return
  }
  func.func @transform_0(%arg0: i32, %arg1: i32) -> (i32, i32, i32) {
    %c0_i32 = arith.constant 0 : i32
    %c0_i32_0 = arith.constant 0 : i32
    %c0_i32_1 = arith.constant 0 : i32
    return %arg0, %c0_i32, %c0_i32_0 : i32, i32, i32
  }
  func.func @transform_1(%arg0: i32, %arg1: i32) -> (i32, i32) {
    %c0_i32 = arith.constant 0 : i32
    %c0_i32_0 = arith.constant 0 : i32
    %c0_i32_1 = arith.constant 0 : i32
    return %c0_i32, %c0_i32_0 : i32, i32
  }
  func.func @transform_2(%arg0: i32, %arg1: i32) -> (i32, i32) {
    %c0_i32 = arith.constant 0 : i32
    %c0_i32_0 = arith.constant 0 : i32
    %c0_i32_1 = arith.constant 0 : i32
    return %c0_i32, %c0_i32_0 : i32, i32
  }
  func.func @transform_3(%arg0: i32, %arg1: i32) -> (i32, i32) {
    %c0_i32 = arith.constant 0 : i32
    %c0_i32_0 = arith.constant 0 : i32
    %c0_i32_1 = arith.constant 0 : i32
    return %c0_i32, %c0_i32_0 : i32, i32
  }
  func.func @transform_4(%arg0: i32, %arg1: i32) -> (i32, i32) {
    %c0_i32 = arith.constant 0 : i32
    %c0_i32_0 = arith.constant 0 : i32
    %c0_i32_1 = arith.constant 0 : i32
    return %c0_i32, %c0_i32_0 : i32, i32
  }
  func.func @transform_5(%arg0: i32, %arg1: i32) -> (i32, i32) {
    %c0_i32 = arith.constant 0 : i32
    %c0_i32_0 = arith.constant 0 : i32
    %c0_i32_1 = arith.constant 0 : i32
    return %c0_i32, %c0_i32_0 : i32, i32
  }
  func.func @transform_6(%arg0: i32, %arg1: i32) -> (i32, i32) {
    %c0_i32 = arith.constant 0 : i32
    %c0_i32_0 = arith.constant 0 : i32
    %c0_i32_1 = arith.constant 0 : i32
    return %c0_i32, %c0_i32_0 : i32, i32
  }
  func.func @transform_7(%arg0: i32, %arg1: i32) -> (i32, i32) {
    %c0_i32 = arith.constant 0 : i32
    %c0_i32_0 = arith.constant 0 : i32
    %c0_i32_1 = arith.constant 0 : i32
    return %c0_i32, %c0_i32_0 : i32, i32
  }
  func.func @transform_8(%arg0: i32, %arg1: i32) -> (i32, i32) {
    %c0_i32 = arith.constant 0 : i32
    %c0_i32_0 = arith.constant 0 : i32
    %c0_i32_1 = arith.constant 0 : i32
    return %c0_i32, %c0_i32_0 : i32, i32
  }
  func.func @transform_9(%arg0: i32, %arg1: i32) -> (i32, i32, i32) {
    %c0_i32 = arith.constant 0 : i32
    %c0_i32_0 = arith.constant 0 : i32
    return %arg0, %arg1, %c0_i32 : i32, i32, i32
  }
}

</mosaic_0001>

<bundles_post_ra>
// kernel: tpu_custom_call.1
= control target key start
LH: loop header
LB: loop body
LE: loop exit
PB: predicated region body
PF: predicated region fallthrough
CT: control target
= control target key end

     0   :  { %s1987_s0 = inlined_call_operand.hbm [shape: f32[2,16,32], index: 0, kind: input, shape index: {}]   ;;  %s1988_s1 = inlined_call_operand.hbm [shape: f32[32,32], index: 1, kind: input, shape index: {}]   ;;  %s1989_s2 = inlined_call_operand.vmem [shape: f32[1,32], index: 2, kind: input, shape index: {}]   ;;  %s1990_s3 = inlined_call_operand.hbm [shape: f32[32,32], index: 3, kind: input, shape index: {}]   ;;  %s1991_s4 = inlined_call_operand.vmem [shape: f32[1,32], index: 4, kind: input, shape index: {}]   ;;  %s1992_s5 = inlined_call_operand.hbm [shape: f32[32,32], index: 5, kind: input, shape index: {}]   ;;  %s1993_s6 = inlined_call_operand.vmem [shape: f32[1,32], index: 6, kind: input, shape index: {}]   ;;  %s1994_s7 = inlined_call_operand.hbm [shape: f32[32,32], index: 7, kind: input, shape index: {}]   ;;  %s1995_s8 = inlined_call_operand.vmem [shape: f32[1,32], index: 8, kind: input, shape index: {}]   ;;  %s1996_s9 = inlined_call_operand.hbm [shape: f32[2,16,32], index: 9, kind: output, shape index: {}]  }
   0x1   :  { %2007 = sst [smem:[#allocation25_spill]] %s1988_s1 }
   0x2   :  { %2008 = sst [smem:[#allocation26_spill]] %s1989_s2 }
   0x3   :  { %2009 = sst [smem:[#allocation27_spill]] %s1990_s3 }
   0x4   :  { %2010 = sst [smem:[#allocation28_spill]] %s1992_s5 }
   0x5   :  { %2011 = sst [smem:[#allocation29_spill]] %s1994_s7 }
   0x6   :  { %2012 = sst [smem:[#allocation30_spill]] %s1995_s8 }
   0x7   :  { %2013 = sst [smem:[#allocation31_spill]] %s1996_s9 }
   0x8   :  { %14 = vsyncpa [#allocation5], 0 }
   0x9   :  { %16 = vsyncpa [#allocation5 + $0x1], 0 }
   0xa   :  { %17 = vsyncpa [#allocation8], 0 }
   0xb   :  { %18 = vsyncpa [#allocation11], 0 }
   0xc   :  { %19 = vsyncpa [#allocation6], 0 }
   0xd   :  { %21 = vsyncpa [#allocation6 + $0x1], 0  ;;  %s1665_s30 = smov 0   ;;  %s1667_s10 = smov 0  }
   0xe   :  { %s1669_s11 = smov 0   ;;  %s1671_s12 = smov 0  }
   0xf   :  { %s1673_s13 = smov 0   ;;  %s1675_s14 = smov 0  }
  0x10   :  { %s1677_s15 = smov 0   ;;  %s1679_s16 = smov 0  }
  0x11   :  { %s1681_s17 = smov 0   ;;  %s1683_s18 = smov 0  }
  0x12   :  { %s1685_s19 = smov 0  }
  0x13 LB: > { %2014 = sst [smem:[#allocation18_spill]] %s1561_s30  ;;  %s1079_s20 = sadd.s32 4294967295, %s1601_s19   ;;  %s1601_s19 = sphi %s1685_s19, %s27_s19   ;;  %s1597_s18 = sphi %s1683_s18, %s2051_s18   ;;  %s1593_s17 = sphi %s1681_s17, %s2042_s17   ;;  %s1589_s16 = sphi %s1679_s16, %s2050_s16   ;;  %s1585_s15 = sphi %s1677_s15, %s2041_s15   ;;  %s1581_s14 = sphi %s1675_s14, %s2049_s14   ;;  %s1577_s13 = sphi %s1673_s13, %s2048_s13   ;;  %s1573_s12 = sphi %s1671_s12, %s2047_s12   ;;  %s1569_s11 = sphi %s1669_s11, %s2046_s11   ;;  %s1565_s10 = sphi %s1667_s10, %s2045_s10   ;;  %s1561_s30 = sphi %s1665_s30, %s2044_s30  }
  0x14   : > { %2015 = sst [smem:[#allocation19_spill]] %s1589_s16  ;;  %s1080_s21 = sadd.s32 4294967294, %s1601_s19  }
  0x15   : > { %2016 = sst [smem:[#allocation20_spill]] %s1593_s17  ;;  %p59_p0 = scmp.ne.s32.totalorder %s1577_s13, %s1573_s12 }
  0x16   : > { %p1721_p1 = scmp.eq.s32.totalorder %s1079_s20, 0  ;;  %p252_p2 = scmp.ne.s32.totalorder %s1569_s11, %s1565_s10 }
  0x17   : > { %p253_p3 = scmp.eq.s32.totalorder %s1079_s20, 3  ;;  %p258_p5 = scmp.ne.s32.totalorder %s1565_s10, %s1561_s30 }
  0x18   : > { %p1729_p4 = por %p1721_p1, %p59_p0  ;;  %p259_p7 = scmp.eq.s32.totalorder %s1080_s21, 3 }
  0x19   : > { %p1735_p6 = por %p253_p3, %p252_p2  ;;  %p1081_p8 = scmp.ge.s32.totalorder %s1601_s19, 1 }
  0x1a   : > { %p266_p9 = scmp.lt.s32.totalorder %s1601_s19, 5  ;;  %p1741_p10 = por %p259_p7, %p258_p5 }
  0x1b   : > { %s2019_s24 = scalar_select %p1735_p6, 1, 0 }
  0x1c   : > { %s2021_s25 = scalar_select %p1741_p10, 1, 0 }
  0x1d   : > { %2020 = sst [smem:[#allocation21_spill]] %s2019_s24  ;;  %p1745_p11 = pnand %p1081_p8, %p266_p9 }
  0x1e   : > { %2022 = sst [smem:[#allocation22_spill]] %s2021_s25  ;;  %s1603_s12 = smov [#allocation7]  }
  0x1f   : > { %s2024_s1 = sld [smem:[#allocation25_spill]]  ;;  %p1155_p12 = pneg %p1745_p11 }
  0x20   : > { %s279_s20 = sshll.u32 %s1603_s12, 4  ;;  %s2026_s5 = sld [smem:[#allocation28_spill]]  ;;  %s280_s20 = int_to_ptr.vmem [resolvable:$true] %s279_s20 }
  0x21   : > { %p1756_p13 = pnand %p1155_p12, %p1721_p1  ;;  %s2002_s27 = smov 128  }
  0x22   : > { %s2003_s28 = smov 8   ;;  %s2027_s3 = sld [smem:[#allocation27_spill]] }
  0x23   : > { %s1606_s24 = smov [#allocation10]   ;;  %s1607_s25 = smov [#allocation9]  }
  0x24   : > { %s313_s30 = sshll.u32 %s1606_s24, 4  ;;  %s2028_s7 = sld [smem:[#allocation29_spill]]  ;;  %s314_s30 = int_to_ptr.vmem [resolvable:$true] %s313_s30 }
  0x25   : > { %s277_s29 = sshll.u32 %s2024_s1, 4  ;;  %s1608_s24 = smov [#allocation12]   ;;  %s278_s29 = int_to_ptr.hbm [resolvable:$true] %s277_s29 }
  0x26   : > { %s311_s8 = sshll.u32 %s2026_s5, 4  ;;  %p53_p2 = scmp.ne.s32.totalorder %s1581_s14, %s1577_s13  ;;  %s312_s8 = int_to_ptr.hbm [resolvable:$true] %s311_s8 }
  0x27   : > { %1158 = dma.hbm_to_vmem [thread:$0]  (!%p1756_p13), %s278_s29, 512, %s280_s20, [#allocation8], %s2002_s27, %s2002_s27, %s2003_s28  }
  0x28   : > { %s294_s9 = sshll.u32 %s2027_s3, 4  ;;  %s296_s29 = sshll.u32 %s1607_s25, 4  ;;  %s295_s9 = int_to_ptr.hbm [resolvable:$true] %s294_s9  ;;  %s297_s29 = int_to_ptr.vmem [resolvable:$true] %s296_s29 }
  0x29   : > { %1164 = dma.hbm_to_vmem [thread:$0]  (!%p1756_p13), %s312_s8, 512, %s314_s30, [#allocation11], %s2002_s27, %s2002_s27, %s2003_s28  }
  0x2a   : > { %s328_s12 = sshll.u32 %s2028_s7, 4  ;;  %s330_s8 = sshll.u32 %s1608_s24, 4  ;;  %s329_s12 = int_to_ptr.hbm [resolvable:$true] %s328_s12  ;;  %s331_s8 = int_to_ptr.vmem [resolvable:$true] %s330_s8 }
  0x2b   : > { %1161 = dma.hbm_to_vmem [thread:$0]  (!%p1756_p13), %s295_s9, 512, %s297_s29, [#allocation8], %s2002_s27, %s2002_s27, %s2003_s28  }
  0x2c   : > { %1167 = dma.hbm_to_vmem [thread:$0]  (!%p1756_p13), %s329_s12, 512, %s331_s8, [#allocation11], %s2002_s27, %s2002_s27, %s2003_s28  }
  0x2d   : > { %s36_s30 = sadd.s32 1, %s1593_s17  ;;  %s39_s25 = sadd.s32 1, %s1597_s18 }
  0x2e   : > { %p37_p0 = scmp.ge.s32.totalorder %s36_s30, 2  ;;  %s46_s9 = sadd.s32 1, %s1581_s14 }
  0x2f   : > { %p54_p3 = scmp.eq.s32.totalorder %s1601_s19, 0  ;;  %s242_s1 = sadd.s32 1, %s1569_s11 }
  0x30   : > { %s2053_s30 = smov (%p37_p0, %s36_s30), 0  ;;  %s2055_s25 = smov (!%p37_p0, %s39_s25), %s1597_s18 }
  0x31   : > { %2029 = sst [smem:[#allocation23_spill]] %s2053_s30  ;;  %p41_p5 = scmp.ge.s32.totalorder %s2055_s25, 2 }
  0x32   : > { %s238_s21 = ssub.s32 %s1593_s17, %s2053_s30  ;;  %p1800_p7 = por %p54_p3, %p53_p2 }
  0x33   : > { %s2057_s25 = smov (%p41_p5, %s2055_s25), 0  ;;  %p1180_p8 = scmp.lt.s32.totalorder %s1601_s19, 4 }
  0x34   : > { %2031 = sst [smem:[#allocation24_spill]] %s2057_s25  ;;  %s347_s20 = sand.u32 1, %s1581_s14  }
  0x35   : > { %s43_s12 = ssub.s32 %s1597_s18, %s2057_s25  ;;  %s1126_s24 = sshll.u32 %s1597_s18, 4 }
  0x36   : > { %p44_p9 = scmp.eq.s32.totalorder %s43_s12, 0  ;;  %s239_s8 = sor.u32 %s238_s21, %s43_s12 }
  0x37   : > { %p240_p12 = scmp.eq.s32.totalorder %s239_s8, 0  ;;  %s1087_s27 = sshll.u32 %s347_s20, 4 }
  0x38   : > { %s1813_s28 = scalar_select %p44_p9, %s1581_s14, %s46_s9  }
  0x39   : > { %s1816_s3 = scalar_select %p240_p12, %s1569_s11, %s242_s1  }
  0x3a   : > { %s356_s30 = scalar_lea.hbm %s1987_s0, %s1126_s24  ;;  %s351_s16 = scalar_lea.vmem [#allocation4], %s1087_s27 }
  0x3b   : > { %s357_s17 = sshll.u32 %s356_s30, 4  ;;  %s359_s2 = sshll.u32 %s351_s16, 4  ;;  %s358_s17 = int_to_ptr.hbm [resolvable:$true] %s357_s17  ;;  %s360_s2 = int_to_ptr.vmem [resolvable:$true] %s359_s2 }
  0x3c   : > { %p1169_p13 = pnand %p1180_p8, %p1800_p7  ;;  %s348_s25 = scalar_lea.sflag [#allocation5], %s347_s20 }
  0x3d   : > { %s2032_s21 = smov 8   ;;  %s2033_s12 = smov 128  }
  0x3e   : > { %1171 = dma.hbm_to_vmem [thread:$0]  (!%p1169_p13), %s358_s17, 256, %s360_s2, %s348_s25, %s2033_s12, %s2033_s12, %s2032_s21  }
  0x3f   : > { %371 = sbr.rel (%p1745_p11) target bundleno = 1275 (0x4fb), region = 56  ;;  %s373_s5 = sand.u32 (!%p1745_p11), 1, %s1577_s13  }
  0x40   : > { %s1091_s7 = sshll.u32 (!%p1745_p11), %s373_s5, 4  ;;  %s374_s30 = scalar_lea.sflag (!%p1745_p11), [#allocation5], %s373_s5 }
  0x41   : > { %s1831_s27 = scalar_lea.vmem (!%p1745_p11), [#allocation4], %s1091_s7 }
  0x44   : > { %1544 = dma.done.wait (%p1729_p4), %s374_s30, 256  }
  0x45   : > { %1546 = vsyncadd (%p1729_p4), %s374_s30, 4294967040 }
  0x46   : > { %1548 = dma.done.wait (%p1721_p1), [#allocation8], 1024  }
  0x47   : > { %1550 = vsyncadd (%p1721_p1), [#allocation8], 4294966272 }
  0x48   : > { %1552 = dma.done.wait (%p1721_p1), [#allocation11], 1024  }
  0x49   : > { %1554 = vsyncadd (%p1721_p1), [#allocation11], 4294966272  ;;  %s430_s2 = sand.u32 1, %s1565_s10   ;;  %p1097_p4 = scmp.ne.s32.totalorder %s1585_s15, 0 }
  0x4a   : > { %s1848_s16 = sshll.u32 %s430_s2, 3 }
  0x4b   : > { %s432_s17 = scalar_lea.vmem [#allocation13], %s1848_s16  ;;  %436 = sbr.rel (%p1097_p4) target bundleno = 224 (0xe0), region = 80 }
  0x50   : > { %v442_v0 = vld [vmem:[#allocation9 + $0x18] sm:$0xff]  ;;  %v441_v2 = vld [vmem:[#allocation9 + $0x10] sm:$0xff]  ;;  %v440_v4 = vld [vmem:[#allocation9 + $0x8] sm:$0xff]  ;;  %vm447_vm0 = vcmask 261120  }
  0x51   : > { %v482_v1 = vld [vmem:[#allocation10 + $0x18] sm:$0xff]  ;;  %1127 = vmatpush.msra.mxu2 %v442_v0  ;;  %v481_v3 = vld [vmem:[#allocation10 + $0x10] sm:$0xff]  ;;  %v480_v5 = vld [vmem:[#allocation10 + $0x8] sm:$0xff]  ;;  %466 = vmatpush.msra.mxu0 %v442_v0 }
  0x52   : > { %1131 = vmatpush.msra.mxu3 %v482_v1  ;;  %499 = vmatpush.msra.mxu1 %v482_v1  ;;  %v439_v6 = vld [vmem:[#allocation9] sm:$0xff]  ;;  %v438_v8 = vld [vmem:[%s1831_s27 + $0x8] sm:$0xff] }
  0x53   : > { %1128 = vmatpush.msra.mxu2 %v441_v2  ;;  %v479_v7 = vld [vmem:[#allocation10] sm:$0xff]  ;;  %467 = vmatpush.msra.mxu0 %v441_v2 }
  0x54   : > { %1132 = vmatpush.msra.mxu3 %v481_v3  ;;  %500 = vmatpush.msra.mxu1 %v481_v3  ;;  %v437_v9 = vld [vmem:[%s1831_s27] sm:$0xff] }
  0x55   : > { %1129 = vmatpush.msra.mxu2 %v440_v4  ;;  %468 = vmatpush.msra.mxu0 %v440_v4  ;;  %v1286_v10 = vld [vmem:[%s1991_s4] ss:$0 sm:$0xff] }
  0x56   : > { %1133 = vmatpush.msra.mxu3 %v480_v5  ;;  %501 = vmatpush.msra.mxu1 %v480_v5  ;;  %v1287_v11 = vld [vmem:[%s1993_s6] ss:$0 sm:$0xff] }
  0x57   : > { %1130 = vmatpush.msra.mxu2 %v439_v6  ;;  %469 = vmatpush.msra.mxu0 %v439_v6 }
  0x58   : > { %1134 = vmatpush.msra.mxu3 %v479_v7  ;;  %1099 = vmatmul.msk.f32.vlgmr.msra.gmra.mxu2 %vm447_vm0, %v438_v8 }
  0x59   : > { %1101 = vmatmul.msk.f32.vlgmr.msra.gmra.mxu3 %vm447_vm0, %v438_v8  ;;  %502 = vmatpush.msra.mxu1 %v479_v7 }
  0x5a   : > { %1098 = vmatmul.msk.f32.vlgmr.msra.gmra.mxu0 %vm447_vm0, %v437_v9  ;;  %1100 = vmatmul.msk.f32.vlgmr.msra.gmra.mxu1 %vm447_vm0, %v437_v9 }
  0xd7   : > { %v471_v12 = vpop.f32.mrf.mxu0  ;;  %v504_v13 = vpop.f32.mrf.mxu1 }
  0xd8   : > { %v472_v14 = vadd.f32 %v1286_v10, %v471_v12  ;;  %v505_v15 = vadd.f32 %v1287_v11, %v504_v13 }
  0xda   : > { %477 = vst.msk [vmem:[#allocation2] sm:$0xff] %vm447_vm0, %v472_v14 }
  0xdb   : > { %v474_v16 = vpop.f32.mrf.mxu2  ;;  %510 = vst.msk [vmem:[#allocation3] sm:$0xff] %vm447_vm0, %v505_v15 }
  0xdc   : > { %v507_v17 = vpop.f32.mrf.mxu3  ;;  %v475_v18 = vadd.f32 %v1286_v10, %v474_v16 }
  0xdd   : > { %v508_v19 = vadd.f32 %v1287_v11, %v507_v17 }
  0xde   : > { %478 = vst.msk [vmem:[#allocation2 + $0x8] sm:$0xff] %vm447_vm0, %v475_v18 }
  0xdf   : > { %511 = vst.msk [vmem:[#allocation3 + $0x8] sm:$0xff] %vm447_vm0, %v508_v19 }
  0xe0 PF: > { %v518_v20 = vld [vmem:[#allocation7 + $0x18] sm:$0xff]  ;;  %v517_v21 = vld [vmem:[#allocation7 + $0x10] sm:$0xff]  ;;  %s1102_s9 = sshll.u32 %s1585_s15, 3  ;;  %vm551_vm1 = vcmask 64512   ;;  %v516_v24 = vld [vmem:[#allocation7 + $0x8] sm:$0xff]  ;;  %s1609_s1 = smov 120  }
  0xe1   : > { %539 = vmatpush.msra.mxu0 %v518_v20  ;;  %v547_v23 = vld [vmem:[#allocation2] sm:$0xff]  ;;  %s513_s29 = scalar_lea.vmem %s1831_s27, %s1102_s9 [#allocation4]  ;;  %s1610_s20 = smov 104   ;;  %vm523_vm2 = vcmask 261120   ;;  %vm582_vm3 = vcmask 130048  }
  0xe2   : > { %806 = vrot.lane.b32.xlu2 %v547_v23, %s1610_s20  ;;  %v515_v25 = vld [vmem:[#allocation7] sm:$0xff]  ;;  %s1611_s24 = smov 112   ;;  %s2034_s12 = sld [smem:[#allocation26_spill]]  ;;  %v549_v57 = vld [vmem:[#allocation3] sm:$0xff] }
  0xe3   : > { %540 = vmatpush.msra.mxu0 %v517_v21  ;;  %v514_v26 = vld [vmem:[%s513_s29] sm:$0xff]  ;;  %s1612_s5 = smov 8   ;;  %s1613_s7 = smov 24  }
  0xe4   : > { %s1614_s30 = smov 16   ;;  %s2035_s27 = sld [smem:[#allocation19_spill]] }
  0xe5   : > { %v548_v22 = vld [vmem:[#allocation2 + $0x8] sm:$0xff]  ;;  %541 = vmatpush.msra.mxu0 %v516_v24  ;;  %s2038_s21 = sld [smem:[#allocation30_spill]] }
  0xe6   : > { %634 = vrot.lane.b32.xlu0 %v548_v22, %s1609_s1  ;;  %1104 = vmatpush.xpose.msk.msra.mxu1 %vm551_vm1, %v548_v22  ;;  %v550_v56 = vld [vmem:[#allocation3 + $0x8] sm:$0xff] }
  0xe7   : > { %542 = vmatpush.msra.mxu0 %v515_v25  ;;  %624 = vmatpush.msra.mxu2 %v550_v56  ;;  %v1288_v20 = vpack.i.bf16 %v549_v57, %v550_v56 }
  0xe8   : > { %1103 = vmatmul.msk.f32.vlgmr.msra.gmra.mxu0 %vm523_vm2, %v514_v26  ;;  %v1303_v27 = vld [vmem:[%s2034_s12] ss:$0 sm:$0xff]  ;;  %s953_s12 = sshll.u32 %s432_s17, 4  ;;  %s954_s12 = int_to_ptr.vmem [resolvable:$true] %s953_s12 }
  0xe9   : > { %625 = vmatpush.msra.mxu2 %v549_v57 }
  0xea   : > { %1105 = vmatpush.xpose.msk.msra.mxu1 %vm551_vm1, %v547_v23  ;;  %s1122_s22 = sshll.u32 %s2035_s27, 1 }
  0xeb   : > { %s949_s23 = sadd.s32 %s1585_s15, %s1122_s22  ;;  %s939_s15 = scalar_lea.sflag [#allocation6], %s430_s2 }
  0xec   : > { %s1123_s25 = sshll.u32 %s949_s23, 3 }
  0xee   : > { %632 = vrot.lane.b32.xlu0 %v547_v23, %s1609_s1 }
  0xf6   : > { %722 = vrot.lane.b32.xlu0 %v548_v22, %s1611_s24 }
 0x13c   : > { %v807_v33 = vpop.permute.xlu2 %806 }
 0x158   : > { %v635_v30 = vpop.permute.xlu0 %634 }
 0x159   : > { %1108 = vmatpush.xpose.msk.msra.mxu3 %vm551_vm1, %v635_v30 }
 0x160   : > { %v633_v31 = vpop.permute.xlu0 %632 }
 0x161   : > { %1109 = vmatpush.xpose.msk.msra.mxu3 %vm551_vm1, %v633_v31 }
 0x165   : > { %v544_v28 = vpop.f32.mrf.mxu0 }
 0x166   : > { %v545_v29 = vadd.f32 %v1303_v27, %v544_v28 }
 0x168   : > { %804 = vrot.lane.b32.xlu2 %v545_v29, %s1610_s20  ;;  %630 = vrot.lane.b32.xlu1 %v545_v29, %s1609_s1  ;;  %v723_v32 = vpop.permute.xlu0 %722 }
 0x169   : > { %1106 = vmatmul.msk.f32.vlgmr.msra.gmra.mxu1 %vm551_vm1, %v545_v29  ;;  %1112 = vmatpush.xpose.msk.msrb.mxu0 %vm551_vm1, %v723_v32 }
 0x170   : > { %718 = vrot.lane.b32.xlu2 %v545_v29, %s1611_s24  ;;  %808 = vrot.lane.b32.xlu1 %v548_v22, %s1610_s20 }
 0x178   : > { %720 = vrot.lane.b32.xlu1 %v547_v23, %s1611_s24 }
 0x1c2   : > { %v805_v36 = vpop.permute.xlu2 %804 }
 0x1ca   : > { %v719_v41 = vpop.permute.xlu2 %718 }
 0x1da   : > { %v631_v34 = vpop.permute.xlu1 %630 }
 0x1db   : > { %1110 = vmatmul.msk.f32.vlgmr.msra.gmra.mxu3 %vm551_vm1, %v631_v34 }
 0x1e2   : > { %v809_v35 = vpop.permute.xlu1 %808 }
 0x1e3   : > { %1116 = vmatpush.xpose.msk.msrb.mxu3 %vm551_vm1, %v809_v35 }
 0x1e6   : > { %v578_v37 = vpop.f32.mrf.mxu1 }
 0x1e7   : > { %v581_v38 = vmul.f32 0.35355338, %v578_v37  ;;  %1117 = vmatpush.xpose.msk.msrb.mxu3 %vm551_vm1, %v807_v33 }
 0x1e9   : > { %v583_v39 = vsel %vm582_vm3, %v581_v38, -inf }
 0x1ea   : > { %584 = vmax.xlane.f32.xlu0 %v583_v39  ;;  %1118 = vmatmul.msk.f32.vlgmr.msrb.gmra.mxu3 %vm551_vm1, %v805_v36  ;;  %v721_v40 = vpop.permute.xlu1 %720 }
 0x1eb   : > { %1113 = vmatpush.xpose.msk.msrb.mxu0 %vm551_vm1, %v721_v40 }
 0x1ee   : > { %1114 = vmatmul.msk.f32.vlgmr.msrb.gmra.mxu0 %vm551_vm1, %v719_v41 }
 0x25d   : > { %v585_v42 = vpop.xlane.xlu0 %584 }
 0x25e   : > { %v586_v43 = vsub.f32 %v581_v38, %v585_v42  ;;  %v659_v44 = vpop.f32.mrf.mxu3 }
 0x25f   : > { %v662_v45 = vmul.f32 0.35355338, %v659_v44 }
 0x260   : > { %v587_v46 = vmul.f32 1.442695, %v586_v43 }
 0x261   : > { %v663_v47 = vsel %vm582_vm3, %v662_v45, -inf }
 0x262   : > { %1305 = vpow2.f32 %v587_v46  ;;  %664 = vmax.xlane.f32.xlu1 %v663_v47 }
 0x268   : > { %v1306_v48 = vpop.eup %1305 }
 0x269   : > { %v589_v49 = vsel %vm582_vm3, %v1306_v48, 0.0 }
 0x26a   : > { %590 = vadd.xlane.f32.xlu0 %v589_v49 }
 0x26b   : > { %v747_v53 = vpop.f32.mrf.mxu0 }
 0x26c   : > { %v750_v54 = vmul.f32 0.35355338, %v747_v53 }
 0x26d   : > { %v833_v50 = vpop.f32.mrf.mxu3 }
 0x26e   : > { %v836_v51 = vmul.f32 0.35355338, %v833_v50  ;;  %v751_v55 = vsel %vm582_vm3, %v750_v54, -inf }
 0x270   : > { %v837_v52 = vsel %vm582_vm3, %v836_v51, -inf }
 0x271   : > { %838 = vmax.xlane.f32.xlu2 %v837_v52 }
 0x279   : > { %752 = vmax.xlane.f32.xlu2 %v751_v55 }
 0x2d5   : > { %v665_v58 = vpop.xlane.xlu1 %664 }
 0x2d6   : > { %v666_v59 = vsub.f32 %v662_v45, %v665_v58 }
 0x2d8   : > { %v667_v60 = vmul.f32 1.442695, %v666_v59 }
 0x2da   : > { %1307 = vpow2.f32 %v667_v60 }
 0x2dd   : > { %v591_v61 = vpop.xlane.xlu0 %590 }
 0x2de   : > { %1309 = vrcp.f32 %v591_v61  ;;  %v603_v6 = vand.u32 2147483648, %v591_v61  ;;  %v601_v8 = vand.u32 2147483647, %v591_v61  ;;  %vm597_vm5 = vweird.f32 %v591_v61 }
 0x2e0   : > { %v1900_v62 = vpop.eup %1307  ;;  %v604_v10 = vor.u32 1.1754944e-38, %v603_v6  ;;  %vm602_vm7 = vcmp.eq.f32.partialorder %v601_v8, 8.507059e+37  ;;  %v908_v8 = vld [vmem:[#allocation12 + $0x10] sm:$0xff] }
 0x2e1   : > { %v669_v63 = vsel %vm582_vm3, %v1900_v62, 0.0 }
 0x2e2   : > { %670 = vadd.xlane.f32.xlu1 %v669_v63 }
 0x2e4   : > { %v1310_v0 = vpop.eup %1309  ;;  %v839_v1 = vpop.xlane.xlu2 %838 }
 0x2e5   : > { %v593_v2 = vmul.f32 %v1310_v0, %v591_v61  ;;  %v840_v3 = vsub.f32 %v836_v51, %v839_v1  ;;  %vm598_vm4 = vweird.f32 %v1310_v0 }
 0x2e6   : > { %vm599_vm6 = vmor %vm597_vm5, %vm598_vm4 }
 0x2e7   : > { %v594_v4 = vsub.f32 1.0, %v593_v2  ;;  %v841_v5 = vmul.f32 1.442695, %v840_v3 }
 0x2e9   : > { %v595_v7 = vmul.f32 %v1310_v0, %v594_v4  ;;  %1311 = vpow2.f32 %v841_v5 }
 0x2eb   : > { %v596_v9 = vadd.f32 %v1310_v0, %v595_v7  ;;  %v909_v7 = vld [vmem:[#allocation12 + $0x18] sm:$0xff] }
 0x2ec   : > { %v753_v11 = vpop.xlane.xlu2 %752  ;;  %929 = vmatpush.msra.mxu0 %v909_v7 }
 0x2ed   : > { %v754_v12 = vsub.f32 %v750_v54, %v753_v11  ;;  %v600_v13 = vsel %vm599_vm6, %v1310_v0, %v596_v9  ;;  %v907_v9 = vld [vmem:[#allocation12 + $0x8] sm:$0xff] }
 0x2ee   : > { %v605_v14 = vsel %vm602_vm7, %v604_v10, %v600_v13  ;;  %930 = vmatpush.msra.mxu0 %v908_v8  ;;  %v906_v10 = vld [vmem:[#allocation12] sm:$0xff]  ;;  %vm904_vm7 = vcmask 195584  }
 0x2ef   : > { %v1904_v15 = vpop.eup %1311  ;;  %v755_v16 = vmul.f32 1.442695, %v754_v12  ;;  %v606_v17 = vmul.f32 %v1306_v48, %v605_v14 }
 0x2f0   : > { %v843_v18 = vsel %vm582_vm3, %v1904_v15, 0.0  ;;  %931 = vmatpush.msra.mxu0 %v907_v9 }
 0x2f1   : > { %1313 = vpow2.f32 %v755_v16  ;;  %1107 = vmatmul.msk.f32.vlgmr.msra.gmra.mxu2 %vm582_vm3, %v606_v17  ;;  %844 = vadd.xlane.f32.xlu2 %v843_v18  ;;  %v1304_v17 = vld [vmem:[%s2038_s21] ss:$0 sm:$0xff] }
 0x2f2   : > { %932 = vmatpush.msra.mxu0 %v906_v10 }
 0x2f7   : > { %v1909_v19 = vpop.eup %1313 }
 0x2f8   : > { %v757_v21 = vsel %vm582_vm3, %v1909_v19, 0.0 }
 0x2f9   : > { %758 = vadd.xlane.f32.xlu0 %v757_v21 }
 0x2fb   : > { %1289 = vrot.lane.b32.xlu1 %v1288_v20, %s1609_s1  ;;  %s2037_s1 = sld [smem:[#allocation31_spill]] }
 0x301   : > { %s1491_s23 = scalar_lea.hbm %s2037_s1, 32 }
 0x309   : > { %1294 = vrot.lane.b32.xlu2 %v1288_v20, %s1610_s20  ;;  %s951_s20 = scalar_lea.hbm %s2037_s1, %s1123_s25 }
 0x30d   : > { %1299 = vrot.lane.b32.xlu0 %v1288_v20, %s1611_s24 }
 0x355   : > { %v671_v22 = vpop.xlane.xlu1 %670 }
 0x356   : > { %1315 = vrcp.f32 %v671_v22  ;;  %v683_v29 = vand.u32 2147483648, %v671_v22  ;;  %vm677_vm9 = vweird.f32 %v671_v22  ;;  %v681_v30 = vand.u32 2147483647, %v671_v22 }
 0x358   : > { %v684_v33 = vor.u32 1.1754944e-38, %v683_v29  ;;  %vm682_vm11 = vcmp.eq.f32.partialorder %v681_v30, 8.507059e+37 }
 0x35c   : > { %v1316_v23 = vpop.eup %1315 }
 0x35d   : > { %v673_v24 = vmul.f32 %v1316_v23, %v671_v22  ;;  %vm678_vm8 = vweird.f32 %v1316_v23 }
 0x35e   : > { %vm679_vm10 = vmor %vm677_vm9, %vm678_vm8 }
 0x35f   : > { %v674_v25 = vsub.f32 1.0, %v673_v24 }
 0x361   : > { %v675_v26 = vmul.f32 %v1316_v23, %v674_v25 }
 0x363   : > { %v676_v28 = vadd.f32 %v1316_v23, %v675_v26 }
 0x364   : > { %v845_v27 = vpop.xlane.xlu2 %844 }
 0x365   : > { %1317 = vrcp.f32 %v845_v27  ;;  %v680_v32 = vsel %vm679_vm10, %v1316_v23, %v676_v28  ;;  %v857_v43 = vand.u32 2147483648, %v845_v27  ;;  %v855_v45 = vand.u32 2147483647, %v845_v27 }
 0x366   : > { %v685_v41 = vsel %vm682_vm11, %v684_v33, %v680_v32  ;;  %vm851_vm13 = vweird.f32 %v845_v27 }
 0x367   : > { %v686_v46 = vmul.f32 %v1900_v62, %v685_v41  ;;  %v858_v51 = vor.u32 1.1754944e-38, %v857_v43  ;;  %vm856_vm15 = vcmp.eq.f32.partialorder %v855_v45, 8.507059e+37 }
 0x36b   : > { %v1318_v31 = vpop.eup %1317 }
 0x36c   : > { %v847_v34 = vmul.f32 %v1318_v31, %v845_v27  ;;  %v759_v35 = vpop.xlane.xlu0 %758  ;;  %v1295_v37 = vpop.permute.xlu2 %1294  ;;  %vm852_vm12 = vweird.f32 %v1318_v31 }
 0x36d   : > { %1319 = vrcp.f32 %v759_v35  ;;  %v1290_v36 = vpop.permute.xlu1 %1289  ;;  %v1296_v44 = vunpack.i.l.bf16 %v1295_v37  ;;  %v1297_v48 = vunpack.i.h.bf16 %v1295_v37  ;;  %vm853_vm14 = vmor %vm851_vm13, %vm852_vm12  ;;  %v771_v58 = vand.u32 2147483648, %v759_v35 }
 0x36e   : > { %v848_v38 = vsub.f32 1.0, %v847_v34  ;;  %v1291_v39 = vunpack.i.l.bf16 %v1290_v36  ;;  %v1292_v40 = vunpack.i.h.bf16 %v1290_v36  ;;  %vm765_vm4 = vweird.f32 %v759_v35 }
 0x36f   : > { %v769_v59 = vand.u32 2147483647, %v759_v35  ;;  %v772_v61 = vor.u32 1.1754944e-38, %v771_v58 }
 0x370   : > { %v849_v42 = vmul.f32 %v1318_v31, %v848_v38  ;;  %712 = vmatpush.msrb.mxu2 %v1291_v39 }
 0x371   : > { %vm770_vm6 = vcmp.eq.f32.partialorder %v769_v59, 8.507059e+37 }
 0x372   : > { %v850_v47 = vadd.f32 %v1318_v31, %v849_v42  ;;  %713 = vmatpush.msrb.mxu2 %v1292_v40 }
 0x373   : > { %v1320_v49 = vpop.eup %1319  ;;  %1111 = vmatmul.msk.f32.vlgmr.msrb.gmra.mxu2 %vm582_vm3, %v686_v46 }
 0x374   : > { %v854_v50 = vsel %vm853_vm14, %v1318_v31, %v850_v47  ;;  %v761_v52 = vmul.f32 %v1320_v49, %v759_v35  ;;  %884 = vmatpush.msra.mxu2 %v1296_v44  ;;  %vm766_vm0 = vweird.f32 %v1320_v49  ;;  %v627_v3 = vpop.f32.mrf.mxu2 }
 0x375   : > { %v859_v53 = vsel %vm856_vm15, %v858_v51, %v854_v50  ;;  %vm767_vm5 = vmor %vm765_vm4, %vm766_vm0 }
 0x376   : > { %v762_v54 = vsub.f32 1.0, %v761_v52  ;;  %885 = vmatpush.msra.mxu2 %v1297_v48  ;;  %v860_v56 = vmul.f32 %v1904_v15, %v859_v53 }
 0x378   : > { %v763_v55 = vmul.f32 %v1320_v49, %v762_v54 }
 0x37a   : > { %v764_v57 = vadd.f32 %v1320_v49, %v763_v55 }
 0x37b   : > { %1119 = vmatmul.msk.f32.vlgmr.msra.gmra.mxu2 %vm582_vm3, %v860_v56 }
 0x37c   : > { %v768_v60 = vsel %vm767_vm5, %v1320_v49, %v764_v57 }
 0x37d   : > { %v773_v0 = vsel %vm770_vm6, %v772_v61, %v768_v60 }
 0x37e   : > { %v774_v2 = vmul.f32 %v1909_v19, %v773_v0 }
 0x37f   : > { %v1300_v62 = vpop.permute.xlu0 %1299 }
 0x380   : > { %v1301_v63 = vunpack.i.l.bf16 %v1300_v62  ;;  %v1302_v1 = vunpack.i.h.bf16 %v1300_v62 }
 0x382   : > { %798 = vmatpush.msrb.mxu1 %v1301_v63 }
 0x384   : > { %799 = vmatpush.msrb.mxu1 %v1302_v1 }
 0x385   : > { %1115 = vmatmul.msk.f32.vlgmr.msrb.gmra.mxu1 %vm582_vm3, %v774_v2 }
 0x3f6   : > { %v715_v4 = vpop.f32.mrf.mxu2 }
 0x3f7   : > { %891 = vrot.lane.b32.xlu1 %v715_v4, %s1612_s5  ;;  %s955_s5 = sshll.u32 %s951_s20, 4  ;;  %s956_s5 = int_to_ptr.hbm [resolvable:$true] %s955_s5 }
 0x3fe   : > { %v887_v5 = vpop.f32.mrf.mxu2 }
 0x3ff   : > { %899 = vrot.lane.b32.xlu2 %v887_v5, %s1613_s7  ;;  %s1485_s7 = sshra.s32 %s956_s5, 4  ;;  %s1486_s7 = int_to_ptr.hbm [resolvable:$true] %s1485_s7 }
 0x400   : > { %p1492_p2 = scmp.lt.s32.totalorder %s1486_s7, %s2037_s1 }
 0x402   : > { %v801_v6 = vpop.f32.mrf.mxu1 }
 0x403   : > { %895 = vrot.lane.b32.xlu0 %v801_v6, %s1614_s30  ;;  %s1487_s30 = scalar_lea.hbm %s1486_s7, 8 }
 0x404   : > { %p1488_p1 = scmp.ne.s32.totalorder %s1486_s7, %s1487_s30  ;;  %p1493_p3 = scmp.lt.s32.totalorder %s1491_s23, %s1487_s30 }
 0x406   : > { %p1489_p11 = pnand %p1488_p1, %p1735_p6  ;;  %p1494_p5 = por %p1493_p3, %p1492_p2 }
 0x408   : > { %p1490_p0 = pneg %p1489_p11 }
 0x40a   : > { %p1495_p7 = pnand %p1494_p5, %p1490_p0 }
 0x459   : > { %v900_v14 = vpop.permute.xlu2 %899 }
 0x469   : > { %v892_v11 = vpop.permute.xlu1 %891 }
 0x46a   : > { %v902_v12 = vsel %vm551_vm1, %v627_v3, %v892_v11 }
 0x475   : > { %v896_v13 = vpop.permute.xlu0 %895 }
 0x476   : > { %v903_v15 = vsel %vm582_vm3, %v902_v12, %v896_v13 }
 0x477   : > { %v905_v16 = vsel %vm904_vm7, %v903_v15, %v900_v14 }
 0x478   : > { %1120 = vmatmul.msk.f32.vlgmr.msra.gmra.mxu0 %vm523_vm2, %v905_v16 }
 0x4f5   : > { %v934_v18 = vpop.f32.mrf.mxu0 }
 0x4f6   : > { %v935_v19 = vadd.f32 %v1304_v17, %v934_v18 }
 0x4f8   : > { %937 = vst.msk [vmem:[%s432_s17] sm:$0xff] %vm523_vm2, %v935_v19 }
 0x4f9   : > { %1498 = shalt.err (!%p1495_p7)
}
 0x4fa   : > { %1153 = dma.vmem_to_hbm [thread:$0]  (%p1735_p6), %s954_s12, 128, %s956_s5, %s939_s15  }
 0x4fb PF: > { %s2039_s2 = sld [smem:[#allocation18_spill]]  ;;  %p1185_p8 = scmp.ge.s32.totalorder %s1601_s19, 2 }
 0x4fd   : > { %p1173_p9 = pnand %p1185_p8, %p1741_p10 }
 0x4ff   : > { %p1174_p12 = pneg %p1173_p9 }
 0x501   : > { %s967_s17 = sand.u32 1, %s2039_s2  }
 0x502   : > { %s968_s29 = scalar_lea.sflag [#allocation6], %s967_s17 }
 0x503   : > { %1556 = dma.done.wait (%p1174_p12), %s968_s29, 128  }
 0x504   : > { %1558 = vsyncadd (%p1174_p12), %s968_s29, 4294967168  ;;  %s27_s19 = sadd.s32 1, %s1601_s19   ;;  %s2041_s15 = sld [smem:[#allocation20_spill]] }
 0x505   : > { %p24_p13 = scmp.ge.s32.totalorder %s27_s19, 6   ;;  %s2042_s17 = sld [smem:[#allocation23_spill]] }
 0x506   : > { %s2043_s26 = sld [smem:[#allocation24_spill]]  ;;  %s2044_s30 = smov %s1565_s10 }
 0x507   : > { %s2045_s10 = smov %s1569_s11  ;;  %s2046_s11 = smov %s1816_s3 }
 0x508   : > { %s2047_s12 = smov %s1577_s13  ;;  %s2048_s13 = smov %s1581_s14 }
 0x509   : > { %s2049_s14 = smov %s1813_s28  ;;  %s2050_s16 = smov %s1597_s18 }
 0x50a   :  { %26 = sbr.rel (!%p24_p13) target bundleno = 19 (0x13), region = 122 }
 0x50c   : > { %s2051_s18 = smov %s2043_s26 }
 0x50f   :  { %974 = vsyncpa [#allocation5], 1 }
 0x510   :  { %976 = vsyncpa [#allocation5 + $0x1], 1 }
 0x511   :  { %977 = vsyncpa [#allocation8], 1 }
 0x512   :  { %978 = vsyncpa [#allocation11], 1 }
 0x513   :  { %979 = vsyncpa [#allocation6], 1 }
 0x514   :  { %981 = vsyncpa [#allocation6 + $0x1], 1 }

</bundles_post_ra>
